<compile_context>
chip_gen: v7x
topology: tpu7x:2x2x1
jax: 0.10.0
libtpu: 0.0.40
codegen_flags: <defaults>
</compile_context>

<pallas_src>
import functools

import jax
import jax.numpy as jnp
from jax.experimental import pallas as pl
from jax.experimental.pallas import tpu as pltpu


def _round_up(n, m):
    return -(-n // m) * m


def _layout_from_layers(layers):
    """Static row offsets (multiples of 8 = f32 sublanes) of each layer's [W; b] block."""
    layout = []
    row = 0
    for in_s, out_s in zip(layers, layers[1:]):
        layout.append((row, in_s, out_s))
        row += _round_up(in_s + 1, 8)          # in_s weight rows + 1 bias row, sublane-aligned
    total_rows = _round_up(row, 8)
    max_out = max(o for _, _, o in layout)
    return tuple(layout), total_rows, max_out


def pack_params(params, layers):
    """Pack all (W, b) into ONE slab. Done once at init time, NOT in the per-call path."""
    layout, total_rows, max_out = _layout_from_layers(layers)
    slab = jnp.zeros((total_rows, max_out), jnp.float32)
    for (row, in_s, out_s), (w, b) in zip(layout, params):
        slab = slab.at[row:row + in_s, :out_s].set(w)   # weight rows
        slab = slab.at[row + in_s, :out_s].set(b)       # bias row
    return slab


def _fused_mlp_kernel(x_ref, p_ref, o_ref, *, layout, num_layers):
    """h = tanh(h @ W_l + b_l) for l < L-1, then out = h @ W_{L-1} + b_{L-1}.

    All slices of p_ref are static, sublane-aligned views of the single params slab;
    intermediates stay in vregs, only the final (B, out) result is stored.
    """
    h = x_ref[...]
    for l, (row, in_s, out_s) in enumerate(layout):
        w = p_ref[row:row + in_s, :out_s]                  # (in_l, out_l)
        b = p_ref[row + in_s:row + in_s + 1, :out_s]       # (1, out_l) -> broadcasts over batch
        h = jnp.dot(h, w, preferred_element_type=jnp.float32) + b   # MXU + VPU
        if l < num_layers - 1:
            h = jnp.tanh(h)                                # EUP slot; effectively free
    o_ref[...] = h.astype(o_ref.dtype)


def make_forward(layers, batch, *, max_block_b=512):
    """Build a jitted forward(slab, x) for fixed layer sizes / batch."""
    layout, total_rows, max_out = _layout_from_layers(layers)
    num_layers = len(layers) - 1
    in_dim, out_dim = layers[0], layers[-1]

    # Batch-axis grid: trivial (grid of 1) at small batch, shards across the 2 TCs on
    # v7x when the batch is scaled up. Tiles stay tiny vs. any generation's VMEM.
    block_b = batch if batch <= max_block_b else max_block_b
    assert batch % block_b == 0, "batch must be divisible by the batch block size"
    grid = (batch // block_b,)

    kernel = functools.partial(_fused_mlp_kernel, layout=layout, num_layers=num_layers)

    fwd = pl.pallas_call(
        kernel,
        out_shape=jax.ShapeDtypeStruct((batch, out_dim), jnp.float32),
        grid=grid,
        in_specs=[
            pl.BlockSpec((block_b, in_dim), lambda i: (i, 0)),       # x: tiled over batch
            pl.BlockSpec((total_rows, max_out), lambda i: (0, 0)),   # params slab: one DMA, reused
        ],
        out_specs=pl.BlockSpec((block_b, out_dim), lambda i: (i, 0)),
        compiler_params=pltpu.CompilerParams(dimension_semantics=("parallel",)),
    )

    @jax.jit
    def forward(slab, x):
        return fwd(x, slab)

    return forward


def init_params(key, layers):
    """PyTorch nn.Linear default init: U(-1/sqrt(fan_in), 1/sqrt(fan_in))."""
    params = []
    for in_size, out_size in zip(layers, layers[1:]):
        key, kw, kb = jax.random.split(key, 3)
        bound = 1.0 / jnp.sqrt(jnp.float32(in_size))
        # Stored as (in, out)  == transpose of PyTorch's (out, in) weight.
        w = jax.random.uniform(kw, (in_size, out_size), jnp.float32, -bound, bound)
        b = jax.random.uniform(kb, (out_size,), jnp.float32, -bound, bound)
        params.append((w, b))
    return params


if __name__ == "__main__":
    key = jax.random.PRNGKey(0)

    # Layers = [16, 32, 32, 4]  (in=16, two tanh hidden layers of 32, linear out=4)
    Layers = [16, 32, 32, 4]
    batch = 8

    key, kx = jax.random.split(key)
    x = jax.random.normal(kx, (batch, Layers[0]), dtype=jnp.float32)

    params = init_params(key, Layers)
    slab = pack_params(params, Layers)          # packed ONCE, outside the per-call path

    forward = make_forward(Layers, batch)
    yhat = jax.block_until_ready(forward(slab, x))

    # Sanity check against plain-JAX reference of the same forward pass.
    ref = x
    for l, (w, b) in enumerate(params):
        ref = ref @ w + b
        if l < len(params) - 1:
            ref = jnp.tanh(ref)
    assert yhat.shape == (batch, Layers[-1])
    assert jnp.allclose(yhat, ref, atol=1e-5, rtol=1e-5)

    print("KERNEL_OK")
</pallas_src>

<mosaic_0001>
module attributes {stable_mosaic.version = 11 : i64} {
  func.func @_fused_mlp_kernel(%arg0: i32, %arg1: memref<8x16xf32, #tpu.memory_space<vmem>>, %arg2: memref<104x32xf32, #tpu.memory_space<vmem>>, %arg3: memref<8x4xf32, #tpu.memory_space<vmem>>) attributes {dimension_semantics = [#tpu.dimension_semantics<parallel>], iteration_bounds = array<i64: 1>, scalar_prefetch = 0 : i64, scratch_operands = 0 : i64, tpu.core_type = #tpu.core_type<tc>, window_params = [{transform_indices = @transform_0, window_bounds = array<i64: 8, 16>}, {pipeline_mode = #tpu.pipeline_mode<synchronous>, transform_indices = @transform_1, window_bounds = array<i64: 104, 32>}, {transform_indices = @transform_2, window_bounds = array<i64: 8, 4>}]} {
    %c0 = arith.constant 0 : index
    %c0_0 = arith.constant 0 : index
    %0 = vector.load %arg1[%c0, %c0_0] : memref<8x16xf32, #tpu.memory_space<vmem>>, vector<8x16xf32>
    %c0_1 = arith.constant 0 : index
    %c0_2 = arith.constant 0 : index
    %1 = vector.load %arg2[%c0_1, %c0_2] : memref<104x32xf32, #tpu.memory_space<vmem>>, vector<16x32xf32>
    %c16 = arith.constant 16 : index
    %c0_3 = arith.constant 0 : index
    %2 = vector.load %arg2[%c16, %c0_3] : memref<104x32xf32, #tpu.memory_space<vmem>>, vector<1x32xf32>
    %cst = arith.constant dense<0.000000e+00> : vector<8x32xf32>
    %3 = tpu.matmul %0, %1, %cst {dimension_numbers = #tpu.dot_dimension_numbers<[1], [0], [0], [1], [0, 0, 1, 1], [], []>} : vector<8x16xf32>, vector<16x32xf32>, vector<8x32xf32> -> vector<8x32xf32>
    %4 = vector.broadcast %2 : vector<1x32xf32> to vector<8x32xf32>
    %5 = arith.addf %3, %4 : vector<8x32xf32>
    %6 = math.tanh %5 : vector<8x32xf32>
    %c24 = arith.constant 24 : index
    %c0_4 = arith.constant 0 : index
    %7 = vector.load %arg2[%c24, %c0_4] : memref<104x32xf32, #tpu.memory_space<vmem>>, vector<32x32xf32>
    %c56 = arith.constant 56 : index
    %c0_5 = arith.constant 0 : index
    %8 = vector.load %arg2[%c56, %c0_5] : memref<104x32xf32, #tpu.memory_space<vmem>>, vector<1x32xf32>
    %cst_6 = arith.constant dense<0.000000e+00> : vector<8x32xf32>
    %9 = tpu.matmul %6, %7, %cst_6 {dimension_numbers = #tpu.dot_dimension_numbers<[1], [0], [0], [1], [0, 0, 1, 1], [], []>} : vector<8x32xf32>, vector<32x32xf32>, vector<8x32xf32> -> vector<8x32xf32>
    %10 = vector.broadcast %8 : vector<1x32xf32> to vector<8x32xf32>
    %11 = arith.addf %9, %10 : vector<8x32xf32>
    %12 = math.tanh %11 : vector<8x32xf32>
    %c64 = arith.constant 64 : index
    %c0_7 = arith.constant 0 : index
    %13 = vector.load %arg2[%c64, %c0_7] : memref<104x32xf32, #tpu.memory_space<vmem>>, vector<32x4xf32>
    %c96 = arith.constant 96 : index
    %c0_8 = arith.constant 0 : index
    %14 = vector.load %arg2[%c96, %c0_8] : memref<104x32xf32, #tpu.memory_space<vmem>>, vector<1x4xf32>
    %cst_9 = arith.constant dense<0.000000e+00> : vector<8x4xf32>
    %15 = tpu.matmul %12, %13, %cst_9 {dimension_numbers = #tpu.dot_dimension_numbers<[1], [0], [0], [1], [0, 0, 1, 1], [], []>} : vector<8x32xf32>, vector<32x4xf32>, vector<8x4xf32> -> vector<8x4xf32>
    %16 = vector.broadcast %14 : vector<1x4xf32> to vector<8x4xf32>
    %17 = arith.addf %15, %16 : vector<8x4xf32>
    %c0_10 = arith.constant 0 : index
    %c0_11 = arith.constant 0 : index
    %18 = vector.load %arg3[%c0_10, %c0_11] : memref<8x4xf32, #tpu.memory_space<vmem>>, vector<8x4xf32>
    tpu.vector_store %arg3[%c0_10, %c0_11], %17 {strides = array<i32>} : memref<8x4xf32, #tpu.memory_space<vmem>>, vector<8x4xf32>,
    return
  }
  func.func @transform_0(%arg0: i32) -> (i32, i32) {
    %c0_i32 = arith.constant 0 : i32
    %c0_i32_0 = arith.constant 0 : i32
    return %arg0, %c0_i32 : i32, i32
  }
  func.func @transform_1(%arg0: i32) -> (i32, i32) {
    %c0_i32 = arith.constant 0 : i32
    %c0_i32_0 = arith.constant 0 : i32
    %c0_i32_1 = arith.constant 0 : i32
    return %c0_i32, %c0_i32_0 : i32, i32
  }
  func.func @transform_2(%arg0: i32) -> (i32, i32) {
    %c0_i32 = arith.constant 0 : i32
    %c0_i32_0 = arith.constant 0 : i32
    return %arg0, %c0_i32 : i32, i32
  }
}

</mosaic_0001>

<bundles_post_ra>
// kernel: forward.1
= control target key start
LH: loop header
LB: loop body
LE: loop exit
PB: predicated region body
PF: predicated region fallthrough
CT: control target
= control target key end

     0   :  { %v336_v0 = vmov 0.0|0.0   ;;  %vm337_vm0 = vmmov 0   ;;  %v338_v3 = vmov 0.0   ;;  %vm19_vm1 = vcmask 130048   ;;  %s401_s1 = inlined_call_operand.vmem [shape: f32[104,32], index: 1, kind: input, shape index: {}]   ;;  %s402_s0 = inlined_call_operand.vmem [shape: f32[8,16], index: 0, kind: input, shape index: {}]   ;;  %s403_s2 = inlined_call_operand.vmem [shape: f32[8,4], index: 2, kind: output, shape index: {}]  }
   0x1   :  { %314 = vmatprep.subr.bf16.mxu0 %v336_v0  ;;  %v12_v1 = vld [vmem:[%s401_s1] sm:$0xff]  ;;  %v13_v2 = vld [vmem:[%s401_s1 + $0x8] sm:$0xff]  ;;  %289 = vmatprep.mubr.msk.f32.mxu0 %vm337_vm0, %v338_v3  ;;  %v94_v6 = vld [vmem:[%s401_s1 + $0x18] sm:$0xff]  ;;  %vm103_vm2 = vcmask 261120   ;;  %vm260_vm3 = vcmask 31744  }
   0x2   :  { %v315_v4 = vpack.c.bf16 %v13_v2, %v12_v1  ;;  %317 = vmatprep.subr.bf16.mxu1 %v336_v0  ;;  %300 = vmatprep.mubr.msk.f32.mxu1 %vm337_vm0, %v338_v3  ;;  %v11_v5 = vld [vmem:[%s402_s0] sm:$0xff]  ;;  %v96_v8 = vld [vmem:[%s401_s1 + $0x28] sm:$0xff]  ;;  %v97_v10 = vld [vmem:[%s401_s1 + $0x30] sm:$0xff] }
   0x3   :  { %v95_v7 = vld [vmem:[%s401_s1 + $0x20] sm:$0xff]  ;;  %v321_v11 = vpack.c.bf16 %v97_v10, %v96_v8  ;;  %v266_v12 = vld [vmem:[%s401_s1 + $0x10] ss:$0 sm:$0xff]  ;;  %v179_v18 = vld [vmem:[%s401_s1 + $0x48] sm:$0xff] }
   0x4   :  { %316 = vmatpush3.bf16.msra.mxu0 %v315_v4  ;;  %v318_v9 = vpack.c.bf16 %v95_v7, %v94_v6  ;;  %v178_v17 = vld [vmem:[%s401_s1 + $0x40] sm:$0xff]  ;;  %v180_v19 = vld [vmem:[%s401_s1 + $0x50] sm:$0xff]  ;;  %v181_v21 = vld [vmem:[%s401_s1 + $0x58] sm:$0xff] }
   0x5   :  { %323 = vmatprep.subr.bf16.mxu0 %v336_v0  ;;  %v324_v20 = vpack.c.bf16 %v179_v18, %v178_v17  ;;  %v327_v22 = vpack.c.bf16 %v181_v21, %v180_v19  ;;  %v268_v23 = vld [vmem:[%s401_s1 + $0x38] ss:$0 sm:$0xff]  ;;  %v270_v28 = vld [vmem:[%s401_s1 + $0x60] ss:$0 sm:$0xff] }
   0x6   :  { %319 = vmatpush3.bf16.msra.mxu1 %v318_v9 }
   0x7   :  { %290 = vmatmul.mubr.msk.f32.vlgmr.msra.gmra.mrb[0].mxu0 %vm19_vm1, %v11_v5  ;;  %320 = vmatprep.subr.bf16.mxu1 %v336_v0 }
   0x8   :  { %311 = vmatprep.mubr.msk.f32.mxu0 %vm337_vm0, %v338_v3  ;;  %325 = vmatpush3.bf16.msra.mxu0 %v324_v20 }
   0x9   :  { %326 = vmatprep.subr.bf16.mxu0 %v336_v0 }
   0xa   :  { %322 = vmatpush3.bf16.msra.mxu1 %v321_v11 }
   0xc   :  { %328 = vmatpush3.bf16.msra.mxu0 %v327_v22 }
  0xda   :  { %v89_v13 = vpop.f32.mrb[0].mxu0 }
  0xdb   :  { %v90_v14 = vadd.f32 %v266_v12, %v89_v13  ;;  %v291_v15 = vpop.f32.mrb[1].mxu0 }
  0xdd   :  { %332 = vtanh.f32 %v90_v14 }
  0xe7   :  { %v333_v16 = vpop.eup %332 }
  0xe8   :  { %301 = vmatmul.mubr.msk.f32.vlgmr.msra.gmra.mrb[0].mxu1 %vm103_vm2, %v333_v16 }
 0x1bb   :  { %v173_v24 = vpop.f32.mrb[0].mxu1 }
 0x1bc   :  { %v174_v25 = vadd.f32 %v268_v23, %v173_v24  ;;  %v302_v26 = vpop.f32.mrb[1].mxu1 }
 0x1be   :  { %334 = vtanh.f32 %v174_v25 }
 0x1c8   :  { %v335_v27 = vpop.eup %334 }
 0x1c9   :  { %312 = vmatmul.mubr.msk.f32.vlgmr.msra.gmra.mrb[2].mxu0 %vm103_vm2, %v335_v27 }
 0x29c   :  { %v256_v29 = vpop.f32.mrb[2].mxu0 }
 0x29d   :  { %v257_v30 = vadd.f32 %v270_v28, %v256_v29  ;;  %v313_v31 = vpop.f32.mrb[3].mxu0 }
 0x29f   :  { %261 = vst.msk [vmem:[%s403_s2] sm:$0xff] %vm260_vm3, %v257_v30 }

</bundles_post_ra>
